<compile_context>
chip_gen: v6e
topology: v6e:2x2x1
jax: 0.10.0
libtpu: 0.0.40
codegen_flags: <defaults>
</compile_context>

<pallas_src>
import functools

import jax
import jax.numpy as jnp
from jax.experimental import pallas as pl
from jax.experimental.pallas import tpu as pltpu

LN_EPS = 1e-5  # torch nn.LayerNorm default


def _round_up(x, m):
    return ((x + m - 1) // m) * m


def _layer_norm_f32(x, gamma, beta):
    mean = jnp.mean(x, axis=-1, keepdims=True)
    centered = x - mean
    var = jnp.mean(centered * centered, axis=-1, keepdims=True)
    return centered * jax.lax.rsqrt(var + LN_EPS) * gamma + beta


def _ffn_kernel_resident(x_ref, gamma_ref, beta_ref, w1_ref, b1_ref, w2_ref,
                         b2_ref, o_ref, *, if_resi):
    """Grid = (token tiles,).  Full W1/W2 stay VMEM-resident across tiles."""
    x = x_ref[...].astype(jnp.float32)                              # (tm, D)
    xn = _layer_norm_f32(x, gamma_ref[...].astype(jnp.float32),
                         beta_ref[...].astype(jnp.float32))
    # fc1 + ReLU (MXU in weight dtype, f32 accumulation)
    h = jnp.dot(xn.astype(w1_ref.dtype), w1_ref[...],
                preferred_element_type=jnp.float32)
    h = jnp.maximum(h + b1_ref[...].astype(jnp.float32), 0.0)       # (tm, F)
    # fc2 + bias (+ residual), written straight to the output tile
    y = jnp.dot(h.astype(w2_ref.dtype), w2_ref[...],
                preferred_element_type=jnp.float32)
    y = y + b2_ref[...].astype(jnp.float32)
    if if_resi:
        y = y + x
    o_ref[...] = y.astype(o_ref.dtype)


def _ffn_kernel_chunked(x_ref, gamma_ref, beta_ref, w1_ref, b1_ref, w2_ref,
                        b2_ref, o_ref, xn_ref, acc_ref, *, if_resi):
    """Grid = (token tiles, F chunks).  Axis 1 reduces over the FFN width."""
    k = pl.program_id(1)

    # First F-chunk for this token tile: LayerNorm once, zero accumulator.
    @pl.when(k == 0)
    def _init():
        x = x_ref[...].astype(jnp.float32)
        xn = _layer_norm_f32(x, gamma_ref[...].astype(jnp.float32),
                             beta_ref[...].astype(jnp.float32))
        xn_ref[...] = xn.astype(xn_ref.dtype)      # cached in the matmul dtype
        acc_ref[...] = jnp.zeros_like(acc_ref)

    # fc1 chunk: (tm, D) @ (D, tf) + b1 -> ReLU
    h = jnp.dot(xn_ref[...], w1_ref[...], preferred_element_type=jnp.float32)
    h = jnp.maximum(h + b1_ref[...].astype(jnp.float32), 0.0)       # (tm, tf)

    # fc2 chunk accumulation: (tm, tf) @ (tf, D)
    acc_ref[...] += jnp.dot(h.astype(w2_ref.dtype), w2_ref[...],
                            preferred_element_type=jnp.float32)

    # Last F-chunk: add bias (+ residual), write out.
    @pl.when(k == pl.num_programs(1) - 1)
    def _finalize():
        y = acc_ref[...] + b2_ref[...].astype(jnp.float32)
        if if_resi:
            y = y + x_ref[...].astype(jnp.float32)
        o_ref[...] = y.astype(o_ref.dtype)


def feed_forward(x, gamma, beta, w1, b1, w2, b2, *, if_resi=True,
                 compute_dtype=jnp.bfloat16, tm=512, tf=1024,
                 prefer_resident=True,
                 max_resident_vmem_bytes=40 * 1024 * 1024,
                 vmem_limit_bytes=None):
    """x: (B, S, D). w1: (D, F), b1: (F,), w2: (F, D), b2: (D,), gamma/beta: (D,).

    Matmuls run in `compute_dtype` (bf16 default -> native MXU path); LN,
    biases, accumulation and the residual run in f32.
    """
    B, S, D = x.shape
    F = w1.shape[1]
    M = B * S
    assert w1.shape == (D, F) and w2.shape == (F, D)

    # Weights in the MXU compute dtype; small per-channel params stay f32.
    w1c = w1.astype(compute_dtype)
    w2c = w2.astype(compute_dtype)
    b1f = b1.astype(jnp.float32).reshape(1, F)
    b2f = b2.astype(jnp.float32).reshape(1, D)
    gamma2 = gamma.astype(jnp.float32).reshape(1, D)
    beta2 = beta.astype(jnp.float32).reshape(1, D)

    w_item = jnp.dtype(compute_dtype).itemsize
    x_item = jnp.dtype(x.dtype).itemsize

    # Token-tile size: multiple of the sublane packing of the narrowest dtype
    # in play, clamped to M.  Guarantee >= 2 token tiles so the "parallel"
    # grid axis can be sharded across both v7x TensorCores.
    sub = 8 if (x_item == 4 and w_item == 4) else 16
    tm_eff = min(_round_up(tm, sub), _round_up(M, sub))
    if _round_up(M, tm_eff) // tm_eff < 2 and tm_eff >= 2 * sub:
        tm_eff = _round_up(tm_eff // 2, sub)
    M_pad = _round_up(M, tm_eff)
    n_tiles = M_pad // tm_eff

    x2 = x.reshape(M, D)
    if M_pad != M:
        x2 = jnp.pad(x2, ((0, M_pad - M), (0, 0)))

    # VMEM plan for the resident (single-pass) kernel:
    #   double-buffered W1+W2 + double-buffered x/out tiles + live intermediates.
    resident_bytes = (4 * D * F * w_item                  # W1 + W2, double-buffered
                      + 4 * tm_eff * D * x_item           # x-in + out tiles
                      + tm_eff * F * (4 + w_item)         # h (f32) + bf16 copy
                      + 3 * tm_eff * D * 4)               # xn / y temporaries
    resident = prefer_resident and resident_bytes <= max_resident_vmem_bytes

    if resident:
        grid = (n_tiles,)
        kernel = functools.partial(_ffn_kernel_resident, if_resi=if_resi)
        in_specs = [
            pl.BlockSpec((tm_eff, D), lambda i: (i, 0)),   # x tile
            pl.BlockSpec((1, D), lambda i: (0, 0)),        # gamma
            pl.BlockSpec((1, D), lambda i: (0, 0)),        # beta
            pl.BlockSpec((D, F), lambda i: (0, 0)),        # W1 (resident)
            pl.BlockSpec((1, F), lambda i: (0, 0)),        # b1
            pl.BlockSpec((F, D), lambda i: (0, 0)),        # W2 (resident)
            pl.BlockSpec((1, D), lambda i: (0, 0)),        # b2
        ]
        out_specs = pl.BlockSpec((tm_eff, D), lambda i: (i, 0))
        scratch_shapes = []
        dim_sem = ("parallel",)
        F_pad = F
        w1p, b1p, w2p = w1c, b1f, w2c
        weight_traffic = 2 * D * F * w_item                # streamed once
        vmem_est = resident_bytes
    else:
        # F-chunked fallback for very large FFN widths.  Zero padding along F
        # is semantics-preserving (relu(0)=0, zero W2 rows contribute nothing).
        tf_eff = min(_round_up(tf, 128), _round_up(F, 128))
        F_pad = _round_up(F, tf_eff)
        w1p = jnp.pad(w1c, ((0, 0), (0, F_pad - F))) if F_pad != F else w1c
        b1p = jnp.pad(b1f, ((0, 0), (0, F_pad - F))) if F_pad != F else b1f
        w2p = jnp.pad(w2c, ((0, F_pad - F), (0, 0))) if F_pad != F else w2c

        grid = (n_tiles, F_pad // tf_eff)
        kernel = functools.partial(_ffn_kernel_chunked, if_resi=if_resi)
        in_specs = [
            pl.BlockSpec((tm_eff, D), lambda i, k: (i, 0)),    # x tile (resident over k)
            pl.BlockSpec((1, D), lambda i, k: (0, 0)),         # gamma
            pl.BlockSpec((1, D), lambda i, k: (0, 0)),         # beta
            pl.BlockSpec((D, tf_eff), lambda i, k: (0, k)),    # W1 chunk
            pl.BlockSpec((1, tf_eff), lambda i, k: (0, k)),    # b1 chunk
            pl.BlockSpec((tf_eff, D), lambda i, k: (k, 0)),    # W2 chunk
            pl.BlockSpec((1, D), lambda i, k: (0, 0)),         # b2
        ]
        out_specs = pl.BlockSpec((tm_eff, D), lambda i, k: (i, 0))
        scratch_shapes = [
            pltpu.VMEM((tm_eff, D), compute_dtype),   # cached LN output (matmul dtype)
            pltpu.VMEM((tm_eff, D), jnp.float32),     # fc2 accumulator
        ]
        dim_sem = ("parallel", "arbitrary")
        weight_traffic = n_tiles * 2 * D * F_pad * w_item     # re-streamed per tile
        vmem_est = (4 * D * tf_eff * w_item                   # W1/W2 chunks, dbl-buffered
                    + 4 * tm_eff * D * x_item                 # x-in + out tiles
                    + tm_eff * tf_eff * (4 + w_item)          # h (f32) + bf16 copy
                    + tm_eff * D * (4 + w_item)               # acc + xn scratch
                    + 3 * tm_eff * D * 4)                     # temporaries

    if vmem_limit_bytes is None:
        # Derived from the actual buffer plan; capped for v7x's 64 MiB VMEM.
        vmem_limit_bytes = min(48 * 1024 * 1024,
                               max(32 * 1024 * 1024, int(1.5 * vmem_est)))

    cost = pl.CostEstimate(
        flops=4 * M_pad * D * F_pad,                  # 2*M*D*F per matmul, x2
        transcendentals=M_pad,                        # rsqrt per token row
        bytes_accessed=int(2 * M_pad * D * x_item + weight_traffic),
    )

    out = pl.pallas_call(
        kernel,
        out_shape=jax.ShapeDtypeStruct((M_pad, D), x.dtype),
        grid_spec=pltpu.PrefetchScalarGridSpec(
            num_scalar_prefetch=0,
            grid=grid,
            in_specs=in_specs,
            out_specs=out_specs,
            scratch_shapes=scratch_shapes,
        ),
        compiler_params=pltpu.CompilerParams(
            dimension_semantics=dim_sem,
            vmem_limit_bytes=vmem_limit_bytes,
        ),
        cost_estimate=cost,
    )(x2, gamma2, beta2, w1p, b1p, w2p, b2f)

    if M_pad != M:
        out = out[:M]
    return out.reshape(B, S, D)


def _ref_feed_forward(x, gamma, beta, w1, b1, w2, b2, if_resi=True):
    mean = jnp.mean(x, axis=-1, keepdims=True)
    var = jnp.mean((x - mean) ** 2, axis=-1, keepdims=True)
    xn = (x - mean) / jnp.sqrt(var + LN_EPS) * gamma + beta
    h = jnp.maximum(xn @ w1 + b1, 0.0)
    y = h @ w2 + b2
    return y + x if if_resi else y


if __name__ == "__main__":
    # Small, lane-dense demo shapes (D, F multiples of 128).
    B, S = 2, 16
    in_channel = 128      # D
    FFN_channel = 256     # F

    key = jax.random.PRNGKey(0)
    kx, k1, k2, k3, k4 = jax.random.split(key, 5)

    x = jax.random.normal(kx, (B, S, in_channel), dtype=jnp.float32)
    w1 = jax.random.normal(k1, (in_channel, FFN_channel), jnp.float32) * 0.05
    b1 = jax.random.normal(k2, (FFN_channel,), jnp.float32) * 0.01
    w2 = jax.random.normal(k3, (FFN_channel, in_channel), jnp.float32) * 0.05
    b2 = jax.random.normal(k4, (in_channel,), jnp.float32) * 0.01
    gamma = jnp.ones((in_channel,), jnp.float32)
    beta = jnp.zeros((in_channel,), jnp.float32)

    ref_f32 = _ref_feed_forward(x, gamma, beta, w1, b1, w2, b2)
    # Reference with bf16-rounded weights (matches the kernel's MXU dtype).
    w1_bf = w1.astype(jnp.bfloat16).astype(jnp.float32)
    w2_bf = w2.astype(jnp.bfloat16).astype(jnp.float32)
    ref_bf = _ref_feed_forward(x, gamma, beta, w1_bf, b1, w2_bf, b2)

    # 1) Default fast path: bf16 weights, VMEM-resident W1/W2, single-pass kernel.
    out = jax.block_until_ready(feed_forward(x, gamma, beta, w1, b1, w2, b2))
    assert out.shape == (B, S, in_channel)
    assert jnp.allclose(out, ref_bf, atol=5e-2, rtol=5e-2), "bf16 resident mismatch"

    # 2) f32 compute, resident path (exact check vs f32 reference).
    out32 = jax.block_until_ready(
        feed_forward(x, gamma, beta, w1, b1, w2, b2, compute_dtype=jnp.float32))
    assert jnp.allclose(out32, ref_f32, atol=1e-4, rtol=1e-4), "f32 resident mismatch"

    # 3) f32 compute, forced F-chunked reduction path (exact check).
    out_ch = jax.block_until_ready(
        feed_forward(x, gamma, beta, w1, b1, w2, b2, compute_dtype=jnp.float32,
                     prefer_resident=False, tf=128))
    assert jnp.allclose(out_ch, ref_f32, atol=1e-4, rtol=1e-4), "f32 chunked mismatch"

    # 4) bf16 compute, forced F-chunked reduction path.
    out_ch_bf = jax.block_until_ready(
        feed_forward(x, gamma, beta, w1, b1, w2, b2,
                     prefer_resident=False, tf=128))
    assert jnp.allclose(out_ch_bf, ref_bf, atol=5e-2, rtol=5e-2), "bf16 chunked mismatch"

    print("KERNEL_OK")
</pallas_src>

<mosaic_0001>
module attributes {stable_mosaic.version = 11 : i64} {
  func.func @_ffn_kernel_resident(%arg0: i32, %arg1: memref<16x128xf32, #tpu.memory_space<vmem>>, %arg2: memref<1x128xf32, #tpu.memory_space<vmem>>, %arg3: memref<1x128xf32, #tpu.memory_space<vmem>>, %arg4: memref<128x256xbf16, #tpu.memory_space<vmem>>, %arg5: memref<1x256xf32, #tpu.memory_space<vmem>>, %arg6: memref<256x128xbf16, #tpu.memory_space<vmem>>, %arg7: memref<1x128xf32, #tpu.memory_space<vmem>>, %arg8: memref<16x128xf32, #tpu.memory_space<vmem>>) attributes {dimension_semantics = [#tpu.dimension_semantics<parallel>], iteration_bounds = array<i64: 2>, scalar_prefetch = 0 : i64, scratch_operands = 0 : i64, tpu.core_type = #tpu.core_type<tc>, window_params = [{transform_indices = @transform_0, window_bounds = array<i64: 16, 128>}, {pipeline_mode = #tpu.pipeline_mode<synchronous>, transform_indices = @transform_1, window_bounds = array<i64: 1, 128>}, {pipeline_mode = #tpu.pipeline_mode<synchronous>, transform_indices = @transform_2, window_bounds = array<i64: 1, 128>}, {pipeline_mode = #tpu.pipeline_mode<synchronous>, transform_indices = @transform_3, window_bounds = array<i64: 128, 256>}, {pipeline_mode = #tpu.pipeline_mode<synchronous>, transform_indices = @transform_4, window_bounds = array<i64: 1, 256>}, {pipeline_mode = #tpu.pipeline_mode<synchronous>, transform_indices = @transform_5, window_bounds = array<i64: 256, 128>}, {pipeline_mode = #tpu.pipeline_mode<synchronous>, transform_indices = @transform_6, window_bounds = array<i64: 1, 128>}, {transform_indices = @transform_7, window_bounds = array<i64: 16, 128>}]} {
    %c0 = arith.constant 0 : index
    %c0_0 = arith.constant 0 : index
    %0 = vector.load %arg1[%c0, %c0_0] : memref<16x128xf32, #tpu.memory_space<vmem>>, vector<16x128xf32>
    %c0_1 = arith.constant 0 : index
    %c0_2 = arith.constant 0 : index
    %1 = vector.load %arg2[%c0_1, %c0_2] : memref<1x128xf32, #tpu.memory_space<vmem>>, vector<1x128xf32>
    %c0_3 = arith.constant 0 : index
    %c0_4 = arith.constant 0 : index
    %2 = vector.load %arg3[%c0_3, %c0_4] : memref<1x128xf32, #tpu.memory_space<vmem>>, vector<1x128xf32>
    %cst = arith.constant dense<0.000000e+00> : vector<16xf32>
    %3 = vector.multi_reduction <add>, %0, %cst [1] : vector<16x128xf32> to vector<16xf32>
    %4 = vector.shape_cast %3 : vector<16xf32> to vector<16x1xf32>
    %cst_5 = arith.constant 1.280000e+02 : f32
    %5 = vector.broadcast %cst_5 : f32 to vector<16x1xf32>
    %6 = arith.divf %4, %5 : vector<16x1xf32>
    %7 = vector.broadcast %6 : vector<16x1xf32> to vector<16x128xf32>
    %8 = arith.subf %0, %7 : vector<16x128xf32>
    %9 = arith.mulf %8, %8 : vector<16x128xf32>
    %cst_6 = arith.constant dense<0.000000e+00> : vector<16xf32>
    %10 = vector.multi_reduction <add>, %9, %cst_6 [1] : vector<16x128xf32> to vector<16xf32>
    %11 = vector.shape_cast %10 : vector<16xf32> to vector<16x1xf32>
    %cst_7 = arith.constant 1.280000e+02 : f32
    %12 = vector.broadcast %cst_7 : f32 to vector<16x1xf32>
    %13 = arith.divf %11, %12 : vector<16x1xf32>
    %cst_8 = arith.constant 9.99999974E-6 : f32
    %14 = vector.broadcast %cst_8 : f32 to vector<16x1xf32>
    %15 = arith.addf %13, %14 : vector<16x1xf32>
    %16 = math.rsqrt %15 : vector<16x1xf32>
    %17 = vector.broadcast %16 : vector<16x1xf32> to vector<16x128xf32>
    %18 = arith.mulf %8, %17 : vector<16x128xf32>
    %19 = vector.broadcast %1 : vector<1x128xf32> to vector<16x128xf32>
    %20 = arith.mulf %18, %19 : vector<16x128xf32>
    %21 = vector.broadcast %2 : vector<1x128xf32> to vector<16x128xf32>
    %22 = arith.addf %20, %21 : vector<16x128xf32>
    %23 = arith.truncf %22 : vector<16x128xf32> to vector<16x128xbf16>
    %c0_9 = arith.constant 0 : index
    %c0_10 = arith.constant 0 : index
    %24 = vector.load %arg4[%c0_9, %c0_10] : memref<128x256xbf16, #tpu.memory_space<vmem>>, vector<128x256xbf16>
    %cst_11 = arith.constant dense<0.000000e+00> : vector<16x256xf32>
    %25 = tpu.matmul %23, %24, %cst_11 {dimension_numbers = #tpu.dot_dimension_numbers<[1], [0], [0], [1], [0, 0, 1, 1], [], []>} : vector<16x128xbf16>, vector<128x256xbf16>, vector<16x256xf32> -> vector<16x256xf32>
    %c0_12 = arith.constant 0 : index
    %c0_13 = arith.constant 0 : index
    %26 = vector.load %arg5[%c0_12, %c0_13] : memref<1x256xf32, #tpu.memory_space<vmem>>, vector<1x256xf32>
    %27 = vector.broadcast %26 : vector<1x256xf32> to vector<16x256xf32>
    %28 = arith.addf %25, %27 : vector<16x256xf32>
    %cst_14 = arith.constant 0.000000e+00 : f32
    %29 = vector.broadcast %cst_14 : f32 to vector<16x256xf32>
    %30 = arith.maximumf %28, %29 : vector<16x256xf32>
    %31 = arith.truncf %30 : vector<16x256xf32> to vector<16x256xbf16>
    %c0_15 = arith.constant 0 : index
    %c0_16 = arith.constant 0 : index
    %32 = vector.load %arg6[%c0_15, %c0_16] : memref<256x128xbf16, #tpu.memory_space<vmem>>, vector<256x128xbf16>
    %cst_17 = arith.constant dense<0.000000e+00> : vector<16x128xf32>
    %33 = tpu.matmul %31, %32, %cst_17 {dimension_numbers = #tpu.dot_dimension_numbers<[1], [0], [0], [1], [0, 0, 1, 1], [], []>} : vector<16x256xbf16>, vector<256x128xbf16>, vector<16x128xf32> -> vector<16x128xf32>
    %c0_18 = arith.constant 0 : index
    %c0_19 = arith.constant 0 : index
    %34 = vector.load %arg7[%c0_18, %c0_19] : memref<1x128xf32, #tpu.memory_space<vmem>>, vector<1x128xf32>
    %35 = vector.broadcast %34 : vector<1x128xf32> to vector<16x128xf32>
    %36 = arith.addf %33, %35 : vector<16x128xf32>
    %37 = arith.addf %36, %0 : vector<16x128xf32>
    %c0_20 = arith.constant 0 : index
    %c0_21 = arith.constant 0 : index
    %38 = vector.load %arg8[%c0_20, %c0_21] : memref<16x128xf32, #tpu.memory_space<vmem>>, vector<16x128xf32>
    tpu.vector_store %arg8[%c0_20, %c0_21], %37 {strides = array<i32>} : memref<16x128xf32, #tpu.memory_space<vmem>>, vector<16x128xf32>,
    return
  }
  func.func @transform_0(%arg0: i32) -> (i32, i32) {
    %c0_i32 = arith.constant 0 : i32
    %c0_i32_0 = arith.constant 0 : i32
    return %arg0, %c0_i32 : i32, i32
  }
  func.func @transform_1(%arg0: i32) -> (i32, i32) {
    %c0_i32 = arith.constant 0 : i32
    %c0_i32_0 = arith.constant 0 : i32
    %c0_i32_1 = arith.constant 0 : i32
    return %c0_i32, %c0_i32_0 : i32, i32
  }
  func.func @transform_2(%arg0: i32) -> (i32, i32) {
    %c0_i32 = arith.constant 0 : i32
    %c0_i32_0 = arith.constant 0 : i32
    %c0_i32_1 = arith.constant 0 : i32
    return %c0_i32, %c0_i32_0 : i32, i32
  }
  func.func @transform_3(%arg0: i32) -> (i32, i32) {
    %c0_i32 = arith.constant 0 : i32
    %c0_i32_0 = arith.constant 0 : i32
    %c0_i32_1 = arith.constant 0 : i32
    return %c0_i32, %c0_i32_0 : i32, i32
  }
  func.func @transform_4(%arg0: i32) -> (i32, i32) {
    %c0_i32 = arith.constant 0 : i32
    %c0_i32_0 = arith.constant 0 : i32
    %c0_i32_1 = arith.constant 0 : i32
    return %c0_i32, %c0_i32_0 : i32, i32
  }
  func.func @transform_5(%arg0: i32) -> (i32, i32) {
    %c0_i32 = arith.constant 0 : i32
    %c0_i32_0 = arith.constant 0 : i32
    %c0_i32_1 = arith.constant 0 : i32
    return %c0_i32, %c0_i32_0 : i32, i32
  }
  func.func @transform_6(%arg0: i32) -> (i32, i32) {
    %c0_i32 = arith.constant 0 : i32
    %c0_i32_0 = arith.constant 0 : i32
    %c0_i32_1 = arith.constant 0 : i32
    return %c0_i32, %c0_i32_0 : i32, i32
  }
  func.func @transform_7(%arg0: i32) -> (i32, i32) {
    %c0_i32 = arith.constant 0 : i32
    %c0_i32_0 = arith.constant 0 : i32
    return %arg0, %c0_i32 : i32, i32
  }
}

</mosaic_0001>

<bundles_post_ra>
// kernel: tpu_custom_call.1
= control target key start
LH: loop header
LB: loop body
LE: loop exit
PB: predicated region body
PF: predicated region fallthrough
CT: control target
= control target key end

     0   :  { %s1524_s0 = inlined_call_operand.hbm [shape: f32[32,128], index: 0, kind: input, shape index: {}]   ;;  %s1525_s1 = inlined_call_operand.vmem [shape: f32[1,128], index: 1, kind: input, shape index: {}]   ;;  %s1526_s2 = inlined_call_operand.hbm [shape: f32[1,128], index: 2, kind: input, shape index: {}]   ;;  %s1527_s3 = inlined_call_operand.hbm [shape: bf16[128,256], index: 3, kind: input, shape index: {}]   ;;  %s1528_s4 = inlined_call_operand.vmem [shape: f32[1,256], index: 4, kind: input, shape index: {}]   ;;  %s1529_s5 = inlined_call_operand.hbm [shape: bf16[256,128], index: 5, kind: input, shape index: {}]   ;;  %s1530_s6 = inlined_call_operand.vmem [shape: f32[1,128], index: 6, kind: input, shape index: {}]   ;;  %s1531_s7 = inlined_call_operand.hbm [shape: f32[32,128], index: 7, kind: output, shape index: {}]  }
   0x1   :  { %1538 = sst [smem:[#allocation15_spill]] %s1526_s2 }
   0x2   :  { %12 = vsyncpa [#allocation3], 0 }
   0x3   :  { %14 = vsyncpa [#allocation3 + $0x1], 0 }
   0x4   :  { %15 = vsyncpa [#allocation6], 0 }
   0x5   :  { %16 = vsyncpa [#allocation9], 0 }
   0x6   :  { %17 = vsyncpa [#allocation4], 0 }
   0x7   :  { %19 = vsyncpa [#allocation4 + $0x1], 0  ;;  %s1278_s24 = smov 0   ;;  %s1280_s25 = smov 0  }
   0x8   :  { %s1282_s26 = smov 0   ;;  %s1284_s27 = smov 0  }
   0x9 LB: > { %s1299_s28 = sadd.s32 4294967295, %s1224_s27   ;;  %s839_s29 = sadd.s32 4294967294, %s1224_s27   ;;  %s1224_s27 = sphi %s1284_s27, %s1560_s27   ;;  %s1220_s26 = sphi %s1282_s26, %s1559_s26   ;;  %s1216_s25 = sphi %s1280_s25, %s1558_s25   ;;  %s1212_s24 = sphi %s1278_s24, %s1557_s24  }
   0xa   : > { %p45_p0 = scmp.ne.s32.totalorder %s1216_s25, %s1212_s24  ;;  %p1532_p1 = scmp.eq.s32.totalorder %s1299_s28, 0 }
   0xb   : > { %p195_p2 = scmp.eq.s32.totalorder %s1299_s28, 1  ;;  %p201_p3 = scmp.eq.s32.totalorder %s839_s29, 1 }
   0xc   : > { %p1308_p4 = por %p1532_p1, %p45_p0  ;;  %p840_p5 = scmp.ge.s32.totalorder %s1224_s27, 1 }
   0xd   : > { %p1313_p6 = por %p201_p3, %p45_p0  ;;  %p208_p7 = scmp.lt.s32.totalorder %s1224_s27, 3 }
   0xe   : > { %s1539_s30 = scalar_select %p1308_p4, 1, 0 }
   0xf   : > { %s1540_s8 = scalar_select %p1313_p6, 1, 0 }
  0x10   : > { %p1318_p8 = pnand %p840_p5, %p208_p7  ;;  %s1226_s10 = smov [#allocation5]  }
  0x11   : > { %s224_s11 = sshll.u32 %s1226_s10, 4  ;;  %s1227_s12 = smov [#allocation7]   ;;  %s225_s11 = int_to_ptr.vmem [resolvable:$true] %s224_s11 }
  0x12   : > { %s1541_s9 = scalar_select %p1318_p8, 1, 0 }
  0x13   : > { %p934_p10 = pneg %p1318_p8  ;;  %s234_s13 = sshll.u32 %s1227_s12, 4  ;;  %s1331_s13 = int_to_ptr.vmem [resolvable:$true] %s234_s13 }
  0x14   : > { %s1228_s15 = smov [#allocation8]   ;;  %s1057_s17 = scalar_lea.vmem %s225_s11, 16 }
  0x15   : > { %p1327_p11 = pnand %p934_p10, %p1532_p1  ;;  %s250_s16 = sshll.u32 %s1228_s15, 4  ;;  %s251_s16 = int_to_ptr.vmem [resolvable:$true] %s250_s16 }
  0x16   : > { %p1058_p13 = scmp.ne.s32.totalorder %s225_s11, %s1057_s17  ;;  %s1064_s18 = scalar_lea.vmem %s225_s11, 32 }
  0x17   : > { %p1048_p12 = pneg %p1327_p11  ;;  %p1065_p5 = scmp.lt.s32.totalorder %s225_s11, %s225_s11 }
  0x18   : > { %p1066_p7 = scmp.lt.s32.totalorder %s1064_s18, %s1057_s17 }
  0x19   : > { %p1060_p0 = pnand %p1058_p13, %p1048_p12 }
  0x1a   : > { %p1067_p10 = por %p1066_p7, %p1065_p5 }
  0x1b   : > { %p1061_p3 = pneg %p1060_p0 }
  0x1d   : > { %p1068_p9 = pnand %p1067_p10, %p1061_p3 }
  0x1f   : > { %1071 = shalt.err (!%p1068_p9)
}
  0x20   : > { %s1543_s2 = sld [smem:[#allocation15_spill]]  ;;  %s1083_s21 = scalar_lea.vmem %s1331_s13, 2048 }
  0x21   : > { %p1084_p1 = scmp.ne.s32.totalorder %s1331_s13, %s1083_s21  ;;  %p1091_p5 = scmp.lt.s32.totalorder %s1331_s13, %s1331_s13 }
  0x22   : > { %p1092_p3 = scmp.lt.s32.totalorder %s1083_s21, %s1083_s21 }
  0x23   : > { %p1086_p13 = pnand %p1084_p1, %p1048_p12 }
  0x24   : > { %p1093_p9 = por %p1092_p3, %p1091_p5 }
  0x25   : > { %p1087_p0 = pneg %p1086_p13 }
  0x26   : > { %937 = dma.hbm_to_vmem [thread:$0]  (!%p1327_p11), %s1543_s2, 16, %s225_s11, [#allocation6]  }
  0x27   : > { %p1094_p7 = pnand %p1093_p9, %p1087_p0 }
  0x29   : > { %1097 = shalt.err (!%p1094_p7)
}
  0x2a   : > { %s1533_s22 = smov 128   ;;  %s1534_s23 = smov 8  }
  0x2b   : > { %940 = dma.hbm_to_vmem [thread:$0]  (!%p1327_p11), %s1527_s3, 2048, %s1331_s13, [#allocation6], %s1533_s22, %s1533_s22, %s1534_s23  }
  0x2c   : > { %s1109_s11 = scalar_lea.vmem %s251_s16, 2048  ;;  %p1117_p0 = scmp.lt.s32.totalorder %s251_s16, %s251_s16 }
  0x2d   : > { %p1110_p1 = scmp.ne.s32.totalorder %s251_s16, %s1109_s11  ;;  %p1118_p5 = scmp.lt.s32.totalorder %s1109_s11, %s1109_s11 }
  0x2f   : > { %p1112_p10 = pnand %p1110_p1, %p1048_p12  ;;  %p1119_p3 = por %p1118_p5, %p1117_p0 }
  0x31   : > { %p1113_p13 = pneg %p1112_p10 }
  0x33   : > { %p1120_p9 = pnand %p1119_p3, %p1113_p13 }
  0x35   : > { %1123 = shalt.err (!%p1120_p9)
}
  0x36   : > { %s1231_s12 = smov 64   ;;  %s1232_s13 = smov 4  }
  0x37   : > { %943 = dma.hbm_to_vmem [thread:$0]  (!%p1327_p11), %s1529_s5, 2048, %s251_s16, [#allocation9], %s1231_s12, %s1231_s12, %s1232_s13  }
  0x38   : > { %s1368_s18 = sadd.s32 1, %s1224_s27   ;;  %s32_s20 = sadd.s32 1, %s1220_s26 }
  0x39   : > { %s29_s19 = ssub.s32 %s1224_s27, %s1368_s18  ;;  %p39_p7 = scmp.ne.s32.totalorder %s1220_s26, %s1216_s25 }
  0x3a   : > { %p30_p12 = scmp.eq.s32.totalorder %s29_s19, 0  ;;  %p40_p1 = scmp.eq.s32.totalorder %s1224_s27, 0 }
  0x3b   : > { %p955_p10 = scmp.lt.s32.totalorder %s1224_s27, 2  ;;  %p1382_p0 = por %p195_p2, %p39_p7 }
  0x3c   : > { %s1378_s21 = scalar_select %p30_p12, %s1220_s26, %s32_s20  }
  0x3d   : > { %p41_p13 = por %p40_p1, %p39_p7  ;;  %s267_s14 = sand.u32 1, %s1220_s26  }
  0x3e   : > { %s1544_s29 = scalar_select %p1382_p0, 1, 0 }
  0x3f   : > { %s894_s10 = sshll.u32 %s1224_s27, 8  ;;  %s845_s16 = sshll.u32 %s267_s14, 4 }
  0x40   : > { %s1391_s13 = scalar_lea.hbm %s1524_s0, %s894_s10  ;;  %s271_s15 = scalar_lea.vmem [#allocation2], %s845_s16 }
  0x41   : > { %s278_s17 = sshll.u32 %s271_s15, 4  ;;  %p1393_p11 = pnand %p955_p10, %p41_p13  ;;  %s1397_s17 = int_to_ptr.vmem [resolvable:$true] %s278_s17 }
  0x42   : > { %s1399_s20 = scalar_lea.sflag [#allocation3], %s267_s14  ;;  %s1124_s22 = scalar_lea.hbm %s1391_s13, 256 }
  0x43   : > { %p1125_p2 = scmp.ne.s32.totalorder %s1391_s13, %s1124_s22  ;;  %p1126_p5 = pneg %p1393_p11 }
  0x44   : > { %s1129_s16 = scalar_lea.hbm %s1524_s0, 512  ;;  %p1130_p12 = scmp.lt.s32.totalorder %s1391_s13, %s1524_s0 }
  0x45   : > { %p1127_p3 = pnand %p1126_p5, %p1125_p2  ;;  %p1131_p7 = scmp.lt.s32.totalorder %s1129_s16, %s1124_s22 }
  0x47   : > { %p1128_p9 = pneg %p1127_p3  ;;  %p1132_p1 = por %p1131_p7, %p1130_p12 }
  0x49   : > { %p1133_p10 = pnand %p1132_p1, %p1128_p9 }
  0x4b   : > { %1136 = shalt.err (!%p1133_p10)
}
  0x4c   : > { %s1137_s14 = scalar_lea.vmem %s1397_s17, 256  ;;  %s1233_s23 = smov [#allocation2]  }
  0x4d   : > { %p1138_p13 = scmp.ne.s32.totalorder %s1397_s17, %s1137_s14  ;;  %s1142_s2 = sshll.u32 %s1233_s23, 4  ;;  %s1143_s2 = int_to_ptr.vmem [resolvable:$false] %s1142_s2 }
  0x4e   : > { %s1144_s10 = scalar_lea.vmem %s1143_s2, 512  ;;  %p1145_p3 = scmp.lt.s32.totalorder %s1397_s17, %s1143_s2 }
  0x4f   : > { %p1140_p6 = pnand %p1138_p13, %p1126_p5  ;;  %p1146_p0 = scmp.lt.s32.totalorder %s1144_s10, %s1137_s14 }
  0x51   : > { %p1141_p2 = pneg %p1140_p6  ;;  %p1147_p4 = por %p1146_p0, %p1145_p3 }
  0x53   : > { %p1148_p8 = pnand %p1147_p4, %p1141_p2 }
  0x55   : > { %1151 = shalt.err (!%p1148_p8)
}
  0x56   : > { %s1546_s22 = smov 8   ;;  %s1547_s11 = smov 128  }
  0x57   : > { %947 = dma.hbm_to_vmem [thread:$0]  (!%p1393_p11), %s1391_s13, 256, %s1397_s17, %s1399_s20, %s1547_s11, %s1547_s11, %s1546_s22  }
  0x58   : > { %p1548_p6 = scmp.ne.s32.totalorder %s1541_s9, 0 }
  0x59   : > { %s1426_s23 = sand.u32 (!%p1548_p6), 1, %s1216_s25   ;;  %p1549_p4 = scmp.ne.s32.totalorder (!%p1548_p6), %s1539_s30, 0 }
  0x5a   : > { %290 = sbr.rel (%p1548_p6) target bundleno = 841 (0x349), region = 48  ;;  %s849_s2 = sshll.u32 (!%p1548_p6), %s1426_s23, 4 }
  0x5b   : > { %s293_s16 = scalar_lea.sflag (!%p1548_p6), [#allocation3], %s1426_s23  ;;  %s296_s19 = scalar_lea.vmem (!%p1548_p6), [#allocation2], %s849_s2 }
  0x5f   : > { %1195 = dma.done.wait (%p1549_p4), %s293_s16, 256  }
  0x60   : > { %1197 = vsyncadd (%p1549_p4), %s293_s16, 4294967040  ;;  %p1550_p8 = scmp.eq.s32.totalorder %s1299_s28, 0 }
  0x62   : > { %1199 = dma.done.wait (%p1550_p8), [#allocation6], 2064   ;;  %p1551_p0 = pmov %p1550_p8 }
  0x64   : > { %1201 = vsyncadd (%p1551_p0), [#allocation6], 4294965232  ;;  %p1552_p11 = pmov %p1551_p0 }
  0x65   : > { %p1553_p5 = pmov %p1551_p0 }
  0x66   : > { %1203 = dma.done.wait (%p1552_p11), [#allocation9], 2048  }
  0x67   : > { %1205 = vsyncadd (%p1553_p5), [#allocation9], 4294965248  ;;  %v1444_v0 = vld [vmem:[%s296_s19] sm:$0xff]  ;;  %v1446_v1 = vld [vmem:[%s296_s19 + $0x8] sm:$0xff]  ;;  %v1234_v21 = vmov 0   ;;  %v404_v60 = vlaneseq  ;;  %s338_s15 = scalar_lea.vmem [#allocation10], %s849_s2 }
  0x68   : > { %346 = vadd.xlane.f32.xlu0 %v1444_v0  ;;  %v1002_v2 = vld [vmem:[#allocation7 + $0x74] ss:$8 sps:$4 sm:$0xff]   ;;  %v1004_v3 = vld [vmem:[#allocation7 + $0x70] ss:$8 sps:$4 sm:$0xff]   ;;  %v1005_v12 = vld [vmem:[#allocation7 + $0x64] ss:$8 sps:$4 sm:$0xff]   ;;  %526 = vmatprep.mubr.bf16.mxu0 %v1234_v21 }
  0x69   : > { %494 = vmatprep.subr.bf16.mxu0 %v1002_v2  ;;  %v1007_v13 = vld [vmem:[#allocation7 + $0x60] ss:$8 sps:$4 sm:$0xff]   ;;  %v1008_v14 = vld [vmem:[#allocation7 + $0x54] ss:$8 sps:$4 sm:$0xff]   ;;  %v1010_v15 = vld [vmem:[#allocation7 + $0x50] ss:$8 sps:$4 sm:$0xff]  }
  0x6a   : > { %495 = vmatpush1.bf16.msra.mxu0 %v1004_v3  ;;  %v1011_v16 = vld [vmem:[#allocation7 + $0x44] ss:$8 sps:$4 sm:$0xff]   ;;  %v1013_v17 = vld [vmem:[#allocation7 + $0x40] ss:$8 sps:$4 sm:$0xff]   ;;  %v1014_v18 = vld [vmem:[#allocation7 + $0x34] ss:$8 sps:$4 sm:$0xff]  }
  0x6b   : > { %496 = vmatprep.subr.bf16.mxu0 %v1005_v12  ;;  %v1016_v19 = vld [vmem:[#allocation7 + $0x30] ss:$8 sps:$4 sm:$0xff]   ;;  %v1017_v20 = vld [vmem:[#allocation7 + $0x24] ss:$8 sps:$4 sm:$0xff]   ;;  %v1019_v22 = vld [vmem:[#allocation7 + $0x20] ss:$8 sps:$4 sm:$0xff]  }
  0x6c   : > { %348 = vadd.xlane.f32.xlu0 %v1446_v1  ;;  %v1020_v23 = vld [vmem:[#allocation7 + $0x14] ss:$8 sps:$4 sm:$0xff]   ;;  %v1022_v24 = vld [vmem:[#allocation7 + $0x10] ss:$8 sps:$4 sm:$0xff]   ;;  %v1023_v25 = vld [vmem:[#allocation7 + $0x4] ss:$8 sps:$4 sm:$0xff]  }
  0x6d   : > { %v1025_v26 = vld [vmem:[#allocation7] ss:$8 sps:$4 sm:$0xff]   ;;  %v1026_v27 = vld [vmem:[#allocation8 + $0x78] sm:$0xff]   ;;  %v1028_v29 = vld [vmem:[#allocation8 + $0x70] sm:$0xff]   ;;  %v405_v61 = vshrl.u32 %v404_v60, 7  ;;  %s737_s14 = sshll.u32 %s338_s15, 4  ;;  %s1475_s14 = int_to_ptr.vmem [resolvable:$true] %s737_s14 }
  0x6e   : > { %497 = vmatpush1.bf16.msra.mxu0 %v1007_v13  ;;  %v1027_v28 = vld [vmem:[#allocation8 + $0x38] sm:$0xff]   ;;  %896 = vmatprep.subr.bf16.mxu1 %v1026_v27  ;;  %v1029_v30 = vld [vmem:[#allocation8 + $0x30] sm:$0xff]   ;;  %v1030_v31 = vld [vmem:[#allocation8 + $0x68] sm:$0xff]   ;;  %s895_s10 = sshll.u32 %s1299_s28, 8  ;;  %s724_s2 = scalar_lea.sflag [#allocation4], %s1426_s23 }
  0x6f   : > { %498 = vmatprep.subr.bf16.mxu0 %v1008_v14  ;;  %897 = vmatpush3.bf16.msra.mxu1 %v1027_v28  ;;  %v1031_v32 = vld [vmem:[#allocation8 + $0x28] sm:$0xff]   ;;  %v1032_v33 = vld [vmem:[#allocation8 + $0x60] sm:$0xff]   ;;  %v1034_v35 = vld [vmem:[#allocation8 + $0x58] sm:$0xff]   ;;  %v410_v62 = vsub.s32 1, %v405_v61  ;;  %v406_v63 = vsub.s32 0, %v405_v61  ;;  %s1480_s16 = scalar_lea.hbm %s1531_s7, %s895_s10  ;;  %s1152_s19 = scalar_lea.vmem %s1475_s14, 256 }
  0x70   : > { %898 = vmatprep.subr.bf16.mxu1 %v1028_v29  ;;  %v1033_v34 = vld [vmem:[#allocation8 + $0x20] sm:$0xff]   ;;  %v1035_v36 = vld [vmem:[#allocation8 + $0x18] sm:$0xff]   ;;  %v1036_v54 = vld [vmem:[#allocation8 + $0x50] sm:$0xff]   ;;  %p1153_p9 = scmp.ne.s32.totalorder %s1475_s14, %s1152_s19  ;;  %p1554_p12 = scmp.ne.s32.totalorder %s1544_s29, 0 }
  0x71   : > { %v854_v45 = vld [vmem:[%s1525_s1] ss:$0 sm:$0xff]  ;;  %v1037_v55 = vld [vmem:[#allocation8 + $0x10] sm:$0xff]   ;;  %v1038_v56 = vld [vmem:[#allocation8 + $0x48] sm:$0xff]   ;;  %s1235_s28 = smov [#allocation10]  }
  0x72   : > { %499 = vmatpush1.bf16.msra.mxu0 %v1010_v15  ;;  %v855_v49 = vld [vmem:[#allocation5] ss:$0 sm:$0xff]  ;;  %v1039_v57 = vld [vmem:[#allocation8 + $0x8] sm:$0xff]   ;;  %v1040_v58 = vld [vmem:[#allocation8 + $0x40] sm:$0xff]   ;;  %p1154_p7 = pnand %p1153_p9, %p1554_p12  ;;  %s1156_s30 = sshll.u32 %s1235_s28, 4  ;;  %s1157_s30 = int_to_ptr.vmem [resolvable:$false] %s1156_s30 }
  0x73   : > { %500 = vmatprep.subr.bf16.mxu0 %v1011_v16  ;;  %899 = vmatpush3.bf16.msra.mxu1 %v1029_v30  ;;  %v1041_v59 = vld [vmem:[#allocation8] sm:$0xff]   ;;  %v402_v2 = vld [vmem:[%s1528_s4] sm:$0x3]  ;;  %s1158_s9 = scalar_lea.vmem %s1157_s30, 512  ;;  %p1159_p10 = scmp.lt.s32.totalorder %s1475_s14, %s1157_s30 }
  0x74   : > { %900 = vmatprep.subr.bf16.mxu1 %v1030_v31  ;;  %p1155_p1 = pneg %p1154_p7  ;;  %p1160_p13 = scmp.lt.s32.totalorder %s1158_s9, %s1152_s19 }
  0x76   : > { %501 = vmatpush1.bf16.msra.mxu0 %v1013_v17  ;;  %p1161_p2 = por %p1160_p13, %p1159_p10 }
  0x77   : > { %502 = vmatprep.subr.bf16.mxu0 %v1014_v18  ;;  %901 = vmatpush3.bf16.msra.mxu1 %v1031_v32 }
  0x78   : > { %902 = vmatprep.subr.bf16.mxu1 %v1032_v33  ;;  %p1162_p3 = pnand %p1161_p2, %p1155_p1 }
  0x7a   : > { %503 = vmatpush1.bf16.msra.mxu0 %v1016_v19 }
  0x7b   : > { %504 = vmatprep.subr.bf16.mxu0 %v1017_v20  ;;  %903 = vmatpush3.bf16.msra.mxu1 %v1033_v34  ;;  %v872_v20 = vld [vmem:[%s1530_s6] ss:$0 sm:$0xff] }
  0x7c   : > { %904 = vmatprep.subr.bf16.mxu1 %v1034_v35 }
  0x7e   : > { %505 = vmatpush1.bf16.msra.mxu0 %v1019_v22 }
  0x7f   : > { %506 = vmatprep.subr.bf16.mxu0 %v1020_v23  ;;  %905 = vmatpush3.bf16.msra.mxu1 %v1035_v36 }
  0x80   : > { %906 = vmatprep.subr.bf16.mxu1 %v1036_v54 }
  0x82   : > { %507 = vmatpush1.bf16.msra.mxu0 %v1022_v24 }
  0x83   : > { %508 = vmatprep.subr.bf16.mxu0 %v1023_v25  ;;  %907 = vmatpush3.bf16.msra.mxu1 %v1037_v55 }
  0x84   : > { %908 = vmatprep.subr.bf16.mxu1 %v1038_v56 }
  0x86   : > { %509 = vmatpush1.bf16.msra.mxu0 %v1025_v26 }
  0x87   : > { %909 = vmatpush3.bf16.msra.mxu1 %v1039_v57 }
  0x88   : > { %910 = vmatprep.subr.bf16.mxu1 %v1040_v58 }
  0x8b   : > { %911 = vmatpush3.bf16.msra.mxu1 %v1041_v59 }
  0xf1   : > { %v347_v4 = vpop.xlane.xlu0 %346 }
  0xf2   : > { %v351_v5 = vmul.f32 0.0078125, %v347_v4  ;;  %v411_v4 = vrot.slane %v402_v2, %v410_v62 }
  0xf4   : > { %v1451_v6 = vsub.f32 %v1444_v0, %v351_v5  ;;  %v407_v5 = vrot.slane %v402_v2, %v406_v63 }
  0xf5   : > { %v349_v7 = vpop.xlane.xlu0 %348 }
  0xf6   : > { %v352_v8 = vmul.f32 0.0078125, %v349_v7  ;;  %v355_v9 = vmul.f32 %v1451_v6, %v1451_v6 }
  0xf8   : > { %v1456_v10 = vsub.f32 %v1446_v1, %v352_v8  ;;  %357 = vadd.xlane.f32.xlu1 %v355_v9 }
  0xfa   : > { %v356_v11 = vmul.f32 %v1456_v10, %v1456_v10 }
  0xfc   : > { %359 = vadd.xlane.f32.xlu1 %v356_v11 }
 0x181   : > { %v358_v37 = vpop.xlane.xlu1 %357 }
 0x182   : > { %v361_v38 = vmul.f32 0.0078125, %v358_v37 }
 0x184   : > { %v363_v39 = vadd.f32 1e-05, %v361_v38 }
 0x185   : > { %v360_v40 = vpop.xlane.xlu1 %359 }
 0x186   : > { %1042 = vrsqrt.f32 %v363_v39  ;;  %v362_v41 = vmul.f32 0.0078125, %v360_v40 }
 0x188   : > { %v364_v42 = vadd.f32 1e-05, %v362_v41 }
 0x18a   : > { %1044 = vrsqrt.f32 %v364_v42 }
 0x193   : > { %v1043_v43 = vpop.eup %1042 }
 0x194   : > { %v367_v44 = vmul.f32 %v1043_v43, %v1451_v6 }
 0x196   : > { %v375_v48 = vmul.f32 %v854_v45, %v367_v44 }
 0x197   : > { %v1045_v46 = vpop.eup %1044 }
 0x198   : > { %v368_v47 = vmul.f32 %v1045_v46, %v1456_v10  ;;  %v383_v51 = vadd.f32 %v855_v49, %v375_v48 }
 0x19a   : > { %v376_v50 = vmul.f32 %v854_v45, %v368_v47 }
 0x19c   : > { %v384_v52 = vadd.f32 %v855_v49, %v376_v50 }
 0x19e   : > { %v385_v53 = vpack.c.bf16 %v384_v52, %v383_v51 }
 0x1a0   : > { %527 = vmatmul.mubr.bf16.vlgmr.msra.gmra.mxu0 %v385_v53 }
 0x260   : > { %v528_v3 = vpop.f32.mrf.mxu0 }
 0x261   : > { %v529_v10 = vadd.f32 %v528_v3, %v407_v5 }
 0x262   : > { %v530_v6 = vpop.f32.mrf.mxu0 }
 0x263   : > { %v531_v8 = vadd.f32 %v530_v6, %v411_v4  ;;  %v537_v16 = vmax.f32 %v529_v10, 0.0 }
 0x264   : > { %v532_v7 = vpop.f32.mrf.mxu0 }
 0x265   : > { %v533_v9 = vadd.f32 %v532_v7, %v407_v5  ;;  %v538_v14 = vmax.f32 %v531_v8, 0.0 }
 0x266   : > { %v534_v11 = vpop.f32.mrf.mxu0 }
 0x267   : > { %v535_v12 = vadd.f32 %v534_v11, %v411_v4  ;;  %v539_v13 = vmax.f32 %v533_v9, 0.0 }
 0x269   : > { %v540_v15 = vmax.f32 %v535_v12, 0.0  ;;  %v541_v18 = vpack.c.bf16 %v539_v13, %v537_v16 }
 0x26b   : > { %v542_v17 = vpack.c.bf16 %v540_v15, %v538_v14 }
 0x26d   : > { %710 = vmatprep.mubr.bf16.mxu1 %v542_v17 }
 0x26e   : > { %711 = vmatmul.mubr.bf16.vlgmr.msra.gmra.mxu1 %v541_v18 }
 0x32e   : > { %v912_v19 = vpop.f32.mrf.mxu1 }
 0x330   : > { %v913_v21 = vpop.f32.mrf.mxu1 }
 0x331   : > { %v914_v22 = vadd.f32 %v913_v21, %v912_v19 }
 0x332   : > { %v915_v23 = vpop.f32.mrf.mxu1 }
 0x333   : > { %v713_v24 = vadd.f32 %v914_v22, %v872_v20 }
 0x334   : > { %v916_v25 = vpop.f32.mrf.mxu1 }
 0x335   : > { %v719_v26 = vadd.f32 %v713_v24, %v1444_v0  ;;  %v917_v27 = vadd.f32 %v916_v25, %v915_v23 }
 0x337   : > { %721 = vst [vmem:[%s338_s15] sm:$0xff] %v719_v26  ;;  %v716_v28 = vadd.f32 %v917_v27, %v872_v20 }
 0x339   : > { %v720_v29 = vadd.f32 %v716_v28, %v1446_v1 }
 0x33b   : > { %722 = vst [vmem:[%s338_s15 + $0x8] sm:$0xff] %v720_v29 }
 0x33c   : > { %1165 = shalt.err (!%p1162_p3)
}
 0x33d   : > { %s1166_s13 = scalar_lea.hbm %s1480_s16, 256  ;;  %s1170_s12 = scalar_lea.hbm %s1531_s7, 512 }
 0x33e   : > { %p1167_p6 = scmp.ne.s32.totalorder %s1480_s16, %s1166_s13  ;;  %p1171_p0 = scmp.lt.s32.totalorder %s1480_s16, %s1531_s7 }
 0x33f   : > { %p1172_p11 = scmp.lt.s32.totalorder %s1170_s12, %s1166_s13 }
 0x340   : > { %p1168_p4 = pnand %p1167_p6, %p1554_p12 }
 0x341   : > { %p1173_p5 = por %p1172_p11, %p1171_p0 }
 0x342   : > { %p1169_p8 = pneg %p1168_p4 }
 0x344   : > { %p1174_p9 = pnand %p1173_p5, %p1169_p8 }
 0x346   : > { %1177 = shalt.err (!%p1174_p9)
}
 0x347   : > { %s1236_s22 = smov 128   ;;  %s1237_s11 = smov 8  }
 0x348   : > { %932 = dma.vmem_to_hbm [thread:$0]  (%p1554_p12), %s1475_s14, 256, %s1480_s16, %s724_s2, %s1236_s22, %s1236_s22, %s1237_s11  }
 0x349 PF: > { %s752_s19 = sand.u32 1, %s1212_s24   ;;  %p1555_p7 = scmp.ne.s32.totalorder %s1540_s8, 0 }
 0x34a   : > { %p1556_p1 = scmp.ge.s32.totalorder %s1224_s27, 2  ;;  %s753_s28 = scalar_lea.sflag [#allocation4], %s752_s19 }
 0x34c   : > { %p949_p10 = pnand %p1556_p1, %p1555_p7 }
 0x34e   : > { %p950_p13 = pneg %p949_p10 }
 0x350   : > { %1207 = dma.done.wait (%p950_p13), %s753_s28, 256  }
 0x351   : > { %1209 = vsyncadd (%p950_p13), %s753_s28, 4294967040  ;;  %p22_p2 = scmp.ge.s32.totalorder %s1368_s18, 4   ;;  %s1557_s24 = smov %s1216_s25 }
 0x352   : > { %s1558_s25 = smov %s1220_s26  ;;  %s1559_s26 = smov %s1378_s21 }
 0x353   : > { %s1560_s27 = smov %s1368_s18  ;;  %24 = sbr.rel (!%p22_p2) target bundleno = 9 (0x9), region = 105 }
 0x358   :  { %758 = vsyncpa [#allocation3], 1 }
 0x359   :  { %760 = vsyncpa [#allocation3 + $0x1], 1 }
 0x35a   :  { %761 = vsyncpa [#allocation6], 1 }
 0x35b   :  { %762 = vsyncpa [#allocation9], 1 }
 0x35c   :  { %763 = vsyncpa [#allocation4], 1 }
 0x35d   :  { %765 = vsyncpa [#allocation4 + $0x1], 1 }

</bundles_post_ra>
